<compile_context>
chip_gen: v6e
topology: v6e:2x2x1
jax: 0.10.0
libtpu: 0.0.40
codegen_flags: <defaults>
</compile_context>

<pallas_src>
import jax
import jax.numpy as jnp
from jax.experimental import pallas as pl
from jax.experimental.pallas import tpu as pltpu

BN_EPS = 1e-5
LANE = 128


def _dense_classifier_kernel(x_ref, gamma_ref, const_ref, wt_ref, out_ref):
    # x_ref:     (B, D)   flattened features (bf16 or f32; stats done in f32)
    # gamma_ref: (1, D)   f32 BatchNorm1d weight
    # const_ref: (1, Cp)  f32 precomputed (beta @ W.T + b), class dim padded to 128
    # wt_ref:    (Cp, D)  bf16 fc0 weight, PyTorch (out, in) layout, class dim padded
    # out_ref:   (B, Cp)  f32 logits (lane-dense 128-wide output tile)
    x = x_ref[...]
    xf = x if x.dtype == jnp.float32 else x.astype(jnp.float32)

    # Training-mode BN statistics (biased variance), computed in f32.
    mean = jnp.mean(xf, axis=0, keepdims=True)                  # (1, D)
    cen = xf - mean                                             # (B, D) f32
    var = jnp.mean(cen * cen, axis=0, keepdims=True)            # (1, D), biased
    scale = gamma_ref[...] * jax.lax.rsqrt(var + BN_EPS)        # (1, D)

    # BN(x) @ W.T + b == (cen * scale) @ W.T + (beta @ W.T + b)
    # Scale the activation (B << 128 rows), feed the raw bf16 weight: single dot.
    act = (cen * scale).astype(wt_ref.dtype)                    # (B, D) bf16
    dn = (((1,), (1,)), ((), ()))                               # contract feature dims
    logits = jax.lax.dot_general(
        act, wt_ref[...], dn, preferred_element_type=jnp.float32)   # (B, Cp)

    out_ref[...] = (logits + const_ref[...]).astype(out_ref.dtype)


def prepare_dense_classifier_params(gamma, beta, fc_w, fc_b):
    """One-time parameter prep (hoisted out of the per-step forward).

    Returns (gamma_row, const_row, wt_bf16, class_num):
      gamma_row: (1, D) f32
      const_row: (1, Cp) f32  == beta @ W.T + b, zero-padded to Cp lanes
      wt_bf16:   (Cp, D) bf16 fc0 weight, class dim zero-padded to Cp
    """
    C, D = fc_w.shape
    Cp = ((C + LANE - 1) // LANE) * LANE          # lane-dense output width (>= 128)

    wt = jnp.pad(fc_w.astype(jnp.float32), ((0, Cp - C), (0, 0))).astype(jnp.bfloat16)
    const = beta.astype(jnp.float32) @ fc_w.astype(jnp.float32).T + fc_b.astype(jnp.float32)
    const_row = jnp.pad(const, (0, Cp - C)).reshape(1, Cp)
    gamma_row = gamma.reshape(1, D).astype(jnp.float32)
    return gamma_row, const_row, wt, C


def dense_classifier_forward(x_nchw, gamma_row, const_row, wt, class_num,
                             x_dtype=jnp.bfloat16):
    """Training-path forward of dense_classifier (BN train-mode -> fc0 logits).

    x_nchw: (B, 1024, 1, 1) post-avgpool densenet feature.
    gamma_row/const_row/wt: outputs of prepare_dense_classifier_params.
    Returns logits (B, class_num) float32.
    """
    B = x_nchw.shape[0]
    x = x_nchw.reshape(B, -1)                     # (B, 1024)
    D = x.shape[1]
    Cp = wt.shape[0]
    if x.dtype != x_dtype:
        x = x.astype(x_dtype)                     # halve x HBM bytes (stats stay f32)

    # Single-block design: the whole batch sits in VMEM (training-mode BN needs the
    # full batch anyway).  Cap x at 2 MiB so total in-kernel intermediates
    # (~6 bytes/elem of x plus the weight and logits slab) stay well under the
    # 32 MiB scoped-VMEM budget on every generation (incl. v7x's 64 MiB physical).
    assert B * D * x.dtype.itemsize <= 2 * 1024 * 1024, (
        "batch too large for the single-block classifier kernel; "
        "see TODO for the batch-tiled stats+matmul restructure")

    vmem = pl.BlockSpec(memory_space=pltpu.MemorySpace.VMEM)
    out = pl.pallas_call(
        _dense_classifier_kernel,
        out_shape=jax.ShapeDtypeStruct((B, Cp), jnp.float32),
        in_specs=[vmem, vmem, vmem, vmem],
        out_specs=vmem,
        compiler_params=pltpu.CompilerParams(vmem_limit_bytes=32 * 1024 * 1024),
    )(x, gamma_row, const_row, wt)
    return out[:, :class_num]


def init_params(key, num_bottleneck=1024, class_num=16):
    """Deterministic param init matching the module's __init__ semantics."""
    k_gamma, k_fcw = jax.random.split(key, 2)
    # BatchNorm1d: weight ~ N(1.0, 0.02) (weights_init_kaiming), bias default zeros.
    gamma = 1.0 + 0.02 * jax.random.normal(k_gamma, (num_bottleneck,), jnp.float32)
    beta = jnp.zeros((num_bottleneck,), jnp.float32)
    # fc0: weight ~ N(0, 0.001) in PyTorch (out, in) layout, bias = 0.
    fc_w = 0.001 * jax.random.normal(k_fcw, (class_num, num_bottleneck), jnp.float32)
    fc_b = jnp.zeros((class_num,), jnp.float32)
    return gamma, beta, fc_w, fc_b


if __name__ == "__main__":
    key = jax.random.PRNGKey(0)
    k_x, k_p = jax.random.split(key)

    B, D, C = 8, 1024, 16
    # Post-avgpool densenet feature map: NCHW (B, 1024, 1, 1).
    x = jax.random.normal(k_x, (B, D, 1, 1), jnp.float32)
    gamma, beta, fc_w, fc_b = init_params(k_p, num_bottleneck=D, class_num=C)

    # One-time param prep (pad + bf16 cast + beta@W.T+b row), then the forward.
    gamma_row, const_row, wt, class_num = prepare_dense_classifier_params(
        gamma, beta, fc_w, fc_b)
    out = dense_classifier_forward(x, gamma_row, const_row, wt, class_num)
    jax.block_until_ready(out)
    assert out.shape == (B, C)

    # Pure-JAX f32 reference (train-mode BN -> Linear).
    xf = x.reshape(B, -1)
    mean = xf.mean(0, keepdims=True)
    var = ((xf - mean) ** 2).mean(0, keepdims=True)
    ref = ((xf - mean) / jnp.sqrt(var + BN_EPS)) * gamma + beta
    ref = ref @ fc_w.T + fc_b

    # bf16 x feed + bf16 MXU inputs with f32 accumulation: tolerance looser than f32.
    max_err = float(jnp.max(jnp.abs(out - ref)))
    assert jnp.allclose(out, ref, atol=3e-3, rtol=3e-2), max_err

    print("KERNEL_OK")
</pallas_src>

<mosaic_0001>
module attributes {stable_mosaic.version = 11 : i64} {
  func.func @_dense_classifier_kernel(%arg0: memref<8x1024xbf16, #tpu.memory_space<vmem>>, %arg1: memref<1x1024xf32, #tpu.memory_space<vmem>>, %arg2: memref<1x128xf32, #tpu.memory_space<vmem>>, %arg3: memref<128x1024xbf16, #tpu.memory_space<vmem>>, %arg4: memref<8x128xf32, #tpu.memory_space<vmem>>) attributes {dimension_semantics = [], scalar_prefetch = 0 : i64, scratch_operands = 0 : i64, tpu.core_type = #tpu.core_type<tc>} {
    %c0 = arith.constant 0 : index
    %c0_0 = arith.constant 0 : index
    %0 = vector.load %arg0[%c0, %c0_0] : memref<8x1024xbf16, #tpu.memory_space<vmem>>, vector<8x1024xbf16>
    %1 = arith.extf %0 : vector<8x1024xbf16> to vector<8x1024xf32>
    %cst = arith.constant dense<0.000000e+00> : vector<1024xf32>
    %2 = vector.multi_reduction <add>, %1, %cst [0] : vector<8x1024xf32> to vector<1024xf32>
    %3 = vector.shape_cast %2 : vector<1024xf32> to vector<1x1024xf32>
    %cst_1 = arith.constant 8.000000e+00 : f32
    %4 = vector.broadcast %cst_1 : f32 to vector<1x1024xf32>
    %5 = arith.divf %3, %4 : vector<1x1024xf32>
    %6 = vector.broadcast %5 : vector<1x1024xf32> to vector<8x1024xf32>
    %7 = arith.subf %1, %6 : vector<8x1024xf32>
    %8 = arith.mulf %7, %7 : vector<8x1024xf32>
    %cst_2 = arith.constant dense<0.000000e+00> : vector<1024xf32>
    %9 = vector.multi_reduction <add>, %8, %cst_2 [0] : vector<8x1024xf32> to vector<1024xf32>
    %10 = vector.shape_cast %9 : vector<1024xf32> to vector<1x1024xf32>
    %cst_3 = arith.constant 8.000000e+00 : f32
    %11 = vector.broadcast %cst_3 : f32 to vector<1x1024xf32>
    %12 = arith.divf %10, %11 : vector<1x1024xf32>
    %c0_4 = arith.constant 0 : index
    %c0_5 = arith.constant 0 : index
    %13 = vector.load %arg1[%c0_4, %c0_5] : memref<1x1024xf32, #tpu.memory_space<vmem>>, vector<1x1024xf32>
    %cst_6 = arith.constant 9.99999974E-6 : f32
    %14 = vector.broadcast %cst_6 : f32 to vector<1x1024xf32>
    %15 = arith.addf %12, %14 : vector<1x1024xf32>
    %16 = math.rsqrt %15 : vector<1x1024xf32>
    %17 = arith.mulf %13, %16 : vector<1x1024xf32>
    %18 = vector.broadcast %17 : vector<1x1024xf32> to vector<8x1024xf32>
    %19 = arith.mulf %7, %18 : vector<8x1024xf32>
    %20 = arith.truncf %19 : vector<8x1024xf32> to vector<8x1024xbf16>
    %c0_7 = arith.constant 0 : index
    %c0_8 = arith.constant 0 : index
    %21 = vector.load %arg3[%c0_7, %c0_8] : memref<128x1024xbf16, #tpu.memory_space<vmem>>, vector<128x1024xbf16>
    %cst_9 = arith.constant dense<0.000000e+00> : vector<8x128xf32>
    %22 = tpu.matmul %20, %21, %cst_9 {dimension_numbers = #tpu.dot_dimension_numbers<[1], [1], [0], [0], [0, 0, 1, 0], [], []>} : vector<8x1024xbf16>, vector<128x1024xbf16>, vector<8x128xf32> -> vector<8x128xf32>
    %c0_10 = arith.constant 0 : index
    %c0_11 = arith.constant 0 : index
    %23 = vector.load %arg2[%c0_10, %c0_11] : memref<1x128xf32, #tpu.memory_space<vmem>>, vector<1x128xf32>
    %24 = vector.broadcast %23 : vector<1x128xf32> to vector<8x128xf32>
    %25 = arith.addf %22, %24 : vector<8x128xf32>
    %c0_12 = arith.constant 0 : index
    %c0_13 = arith.constant 0 : index
    %26 = vector.load %arg4[%c0_12, %c0_13] : memref<8x128xf32, #tpu.memory_space<vmem>>, vector<8x128xf32>
    tpu.vector_store %arg4[%c0_12, %c0_13], %25 {strides = array<i32>} : memref<8x128xf32, #tpu.memory_space<vmem>>, vector<8x128xf32>,
    return
  }
}

</mosaic_0001>

<bundles_post_ra>
// kernel: tpu_custom_call.1
= control target key start
LH: loop header
LB: loop body
LE: loop exit
PB: predicated region body
PF: predicated region fallthrough
CT: control target
= control target key end

     0   :  { %9 = vsyncpa [#allocation3], 0  ;;  %s1351_s0 = inlined_call_operand.hbm [shape: bf16[8,1024], index: 0, kind: input, shape index: {}]   ;;  %s1352_s1 = inlined_call_operand.hbm [shape: f32[1,1024], index: 1, kind: input, shape index: {}]   ;;  %s1353_s2 = inlined_call_operand.vmem [shape: f32[1,128], index: 2, kind: input, shape index: {}]   ;;  %s1354_s3 = inlined_call_operand.hbm [shape: bf16[128,1024], index: 3, kind: input, shape index: {}]   ;;  %s1355_s4 = inlined_call_operand.hbm [shape: f32[8,128], index: 4, kind: output, shape index: {}]  }
   0x1   :  { %10 = vsyncpa [#allocation6], 0 }
   0x2   :  { %11 = vsyncpa [#allocation4], 0  ;;  %s1072_s15 = smov [#allocation5]   ;;  %s1073_s17 = smov [#allocation2]  }
   0x3   :  { %s28_s16 = sshll.u32 %s1072_s15, 4  ;;  %s18_s18 = sshll.u32 %s1073_s17, 4  ;;  %s29_s16 = int_to_ptr.vmem [resolvable:$true] %s28_s16  ;;  %s19_s18 = int_to_ptr.vmem [resolvable:$true] %s18_s18 }
   0x4   :  { %s994_s19 = scalar_lea.vmem %s29_s16, 128  ;;  %p999_p1 = scmp.lt.s32.totalorder %s29_s16, %s29_s16 }
   0x5   :  { %p995_p0 = scmp.ne.s32.totalorder %s29_s16, %s994_s19  ;;  %p1000_p2 = scmp.lt.s32.totalorder %s994_s19, %s994_s19 }
   0x7   :  { %p1001_p3 = por %p1000_p2, %p999_p1 }
   0x9   :  { %p1002_p4 = pnand %p1001_p3, %p995_p0 }
   0xb   :  { %1005 = shalt.err (!%p1002_p4)
}
   0xc   :  { %31 = dma.hbm_to_vmem [thread:$0]  %s1352_s1, 128, %s29_s16, [#allocation6]  }
   0xd   :  { %s1014_s22 = scalar_lea.vmem %s19_s18, 512  ;;  %p1019_p6 = scmp.lt.s32.totalorder %s19_s18, %s19_s18 }
   0xe   :  { %p1015_p5 = scmp.ne.s32.totalorder %s19_s18, %s1014_s22  ;;  %p1020_p7 = scmp.lt.s32.totalorder %s1014_s22, %s1014_s22 }
  0x10   :  { %p1021_p8 = por %p1020_p7, %p1019_p6 }
  0x12   :  { %p1022_p9 = pnand %p1021_p8, %p1015_p5 }
  0x14   :  { %1025 = shalt.err (!%p1022_p9)
}
  0x15   :  { %21 = dma.hbm_to_vmem [thread:$0]  %s1351_s0, 512, %s19_s18, [#allocation3]  }
  0x16   :  { %s1074_s25 = smov [#allocation7]  }
  0x17   :  { %s39_s26 = sshll.u32 %s1074_s25, 4  ;;  %s40_s26 = int_to_ptr.vmem [resolvable:$true] %s39_s26 }
  0x18   :  { %s1034_s27 = scalar_lea.vmem %s40_s26, 8192  ;;  %p1039_p11 = scmp.lt.s32.totalorder %s40_s26, %s40_s26 }
  0x19   :  { %p1035_p10 = scmp.ne.s32.totalorder %s40_s26, %s1034_s27  ;;  %p1040_p12 = scmp.lt.s32.totalorder %s1034_s27, %s1034_s27 }
  0x1b   :  { %p1041_p13 = por %p1040_p12, %p1039_p11 }
  0x1d   :  { %p1042_p0 = pnand %p1041_p13, %p1035_p10 }
  0x1f   :  { %1045 = shalt.err (!%p1042_p0)
}
  0x20   :  { %s1075_s1 = smov 512   ;;  %s1076_s28 = smov 32  }
  0x21   :  { %45 = dma.hbm_to_vmem [thread:$0]  %s1354_s3, 8192, %s40_s26, [#allocation6], %s1075_s1, %s1075_s1, %s1076_s28  }
  0x22   :  { %1066 = dma.done.wait [#allocation3], 512  }
  0x23   :  { %1067 = vsyncadd [#allocation3], 4294966784 }
  0x24   :  { %1068 = dma.done.wait [#allocation6], 8320  }
  0x25   :  { %1069 = vsyncadd [#allocation6], 4294958976  ;;  %v386_v0 = vld [vmem:[#allocation7 + $0x1c0] sm:$0xff]  ;;  %v387_v2 = vld [vmem:[#allocation7 + $0x1c8] sm:$0xff]  ;;  %s1078_s5 = smov [#allocation8]  }
  0x26   :  { %v390_v1 = vld [vmem:[#allocation7 + $0x1e0] sm:$0xff]  ;;  %v391_v4 = vld [vmem:[#allocation7 + $0x1e8] sm:$0xff]  ;;  %v56_v52 = vld [vmem:[#allocation2] sm:$0xff]  ;;  %s888_s6 = sshll.u32 %s1078_s5, 4  ;;  %s889_s6 = int_to_ptr.vmem [resolvable:$true] %s888_s6 }
  0x27   :  { %v956_v3 = vcombine.high %v386_v0, %v390_v1  ;;  %v955_v5 = vcombine.low %v386_v0, %v390_v1  ;;  %v378_v6 = vld [vmem:[#allocation7 + $0x180] sm:$0xff]  ;;  %v958_v8 = vcombine.high %v387_v2, %v391_v4  ;;  %v957_v9 = vcombine.low %v387_v2, %v391_v4  ;;  %v379_v11 = vld [vmem:[#allocation7 + $0x188] sm:$0xff]  ;;  %v59_v57 = vld [vmem:[#allocation2 + $0x18] sm:$0xff]  ;;  %s1046_s7 = scalar_lea.vmem %s889_s6, 128  ;;  %p1051_p2 = scmp.lt.s32.totalorder %s889_s6, %s889_s6 }
  0x28   :  { %v382_v7 = vld [vmem:[#allocation7 + $0x1a0] sm:$0xff]  ;;  %v383_v12 = vld [vmem:[#allocation7 + $0x1a8] sm:$0xff]  ;;  %v1189_v58 = vunpack.c.l.bf16 %v56_v52  ;;  %v1191_v59 = vunpack.c.h.bf16 %v56_v52  ;;  %v1201_v0 = vunpack.c.l.bf16 %v59_v57  ;;  %v1203_v1 = vunpack.c.h.bf16 %v59_v57  ;;  %p1047_p1 = scmp.ne.s32.totalorder %s889_s6, %s1046_s7  ;;  %p1052_p3 = scmp.lt.s32.totalorder %s1046_s7, %s1046_s7 }
  0x29   :  { %v948_v10 = vcombine.high %v378_v6, %v382_v7  ;;  %v1113_v13 = vld [vmem:[#allocation7 + $0x140] sm:$0xff]  ;;  %721 = vmatprep.subr.bf16.mxu0 %v956_v3  ;;  %v950_v14 = vcombine.high %v379_v11, %v383_v12  ;;  %v1117_v16 = vld [vmem:[#allocation7 + $0x148] sm:$0xff]  ;;  %761 = vmatprep.subr.bf16.mxu1 %v958_v8  ;;  %v947_v24 = vcombine.low %v378_v6, %v382_v7 }
  0x2a   :  { %v1115_v15 = vld [vmem:[#allocation7 + $0x160] sm:$0xff]  ;;  %v1119_v17 = vld [vmem:[#allocation7 + $0x168] sm:$0xff]  ;;  %722 = vmatpush1.bf16.xpose.msra.mxu0 %v955_v5  ;;  %762 = vmatpush1.bf16.xpose.msra.mxu1 %v957_v9  ;;  %v949_v25 = vcombine.low %v379_v11, %v383_v12  ;;  %v68_v2 = vrot.slane %v1189_v58, 4  ;;  %v74_v3 = vrot.slane %v1191_v59, 4  ;;  %v110_v11 = vrot.slane %v1203_v1, 4  ;;  %p1053_p4 = por %p1052_p3, %p1051_p2 }
  0x2b   :  { %v1121_v18 = vld [vmem:[#allocation7 + $0x100] sm:$0xff]  ;;  %v1125_v20 = vld [vmem:[#allocation7 + $0x108] sm:$0xff]  ;;  %723 = vmatprep.subr.bf16.mxu0 %v948_v10  ;;  %763 = vmatprep.subr.bf16.mxu1 %v950_v14  ;;  %v940_v29 = vcombine.high %v1113_v13, %v1115_v15  ;;  %v942_v30 = vcombine.high %v1117_v16, %v1119_v17  ;;  %v939_v31 = vcombine.low %v1113_v13, %v1115_v15  ;;  %v104_v10 = vrot.slane %v1201_v0, 4 }
  0x2c   :  { %v1123_v19 = vld [vmem:[#allocation7 + $0x120] sm:$0xff]  ;;  %v1127_v21 = vld [vmem:[#allocation7 + $0x128] sm:$0xff]  ;;  %v941_v32 = vcombine.low %v1117_v16, %v1119_v17  ;;  %v69_v8 = vadd.f32 %v68_v2, %v1189_v58  ;;  %v75_v9 = vadd.f32 %v74_v3, %v1191_v59  ;;  %p1054_p5 = pnand %p1053_p4, %p1047_p1 }
  0x2d   :  { %v1129_v22 = vld [vmem:[#allocation7 + $0xc0] sm:$0xff]  ;;  %v1133_v26 = vld [vmem:[#allocation7 + $0xc8] sm:$0xff]  ;;  %v932_v36 = vcombine.high %v1121_v18, %v1123_v19  ;;  %v934_v37 = vcombine.high %v1125_v20, %v1127_v21  ;;  %v931_v38 = vcombine.low %v1121_v18, %v1123_v19  ;;  %v933_v39 = vcombine.low %v1125_v20, %v1127_v21 }
  0x2e   :  { %v1131_v23 = vld [vmem:[#allocation7 + $0xe0] sm:$0xff]  ;;  %v1135_v27 = vld [vmem:[#allocation7 + $0xe8] sm:$0xff]  ;;  %v105_v52 = vadd.f32 %v104_v10, %v1201_v0 }
  0x2f   :  { %v1137_v28 = vld [vmem:[#allocation7 + $0x80] sm:$0xff]  ;;  %v1149_v34 = vld [vmem:[#allocation7 + $0x88] sm:$0xff]  ;;  %v924_v43 = vcombine.high %v1129_v22, %v1131_v23  ;;  %v926_v44 = vcombine.high %v1133_v26, %v1135_v27  ;;  %v923_v45 = vcombine.low %v1129_v22, %v1131_v23  ;;  %v925_v46 = vcombine.low %v1133_v26, %v1135_v27 }
  0x30   :  { %v1147_v33 = vld [vmem:[#allocation7 + $0xa0] sm:$0xff]  ;;  %v1151_v35 = vld [vmem:[#allocation7 + $0xa8] sm:$0xff]  ;;  %v106_v51 = vrot.slane %v105_v52, 2 }
  0x31   :  { %v1161_v40 = vld [vmem:[#allocation7 + $0x40] sm:$0xff]  ;;  %v1165_v42 = vld [vmem:[#allocation7 + $0x48] sm:$0xff]  ;;  %v916_v48 = vcombine.high %v1137_v28, %v1147_v33  ;;  %v1356_v22 = vcombine.high %v1149_v34, %v1151_v35 }
  0x32   :  { %v1163_v41 = vld [vmem:[#allocation7 + $0x60] sm:$0xff]  ;;  %v1175_v47 = vld [vmem:[#allocation7 + $0x68] sm:$0xff]  ;;  %724 = vmatpush1.bf16.xpose.msra.mxu0 %v947_v24  ;;  %764 = vmatpush1.bf16.xpose.msra.mxu1 %v949_v25  ;;  %v107_v10 = vadd.f32 %v106_v51, %v105_v52 }
  0x33   :  { %v57_v55 = vld [vmem:[#allocation2 + $0x8] sm:$0xff]  ;;  %v58_v56 = vld [vmem:[#allocation2 + $0x10] sm:$0xff]  ;;  %725 = vmatprep.subr.bf16.mxu0 %v940_v29  ;;  %765 = vmatprep.subr.bf16.mxu1 %v942_v30  ;;  %v70_v29 = vrot.slane %v69_v8, 2  ;;  %v76_v30 = vrot.slane %v75_v9, 2 }
  0x34   :  { %v1193_v60 = vunpack.c.l.bf16 %v57_v55  ;;  %v1195_v61 = vunpack.c.h.bf16 %v57_v55  ;;  %v1197_v62 = vunpack.c.l.bf16 %v58_v56  ;;  %v1199_v63 = vunpack.c.h.bf16 %v58_v56 }
  0x35   :  { %v111_v55 = vadd.f32 %v110_v11, %v1203_v1  ;;  %v71_v54 = vadd.f32 %v70_v29, %v69_v8  ;;  %v77_v53 = vadd.f32 %v76_v30, %v75_v9  ;;  %v108_v16 = vrot.slane %v107_v10, 1 }
  0x36   :  { %v80_v4 = vrot.slane %v1193_v60, 4  ;;  %v86_v5 = vrot.slane %v1195_v61, 4  ;;  %v92_v6 = vrot.slane %v1197_v62, 4  ;;  %v98_v7 = vrot.slane %v1199_v63, 4 }
  0x37   :  { %v72_v8 = vrot.slane %v71_v54, 1  ;;  %v78_v9 = vrot.slane %v77_v53, 1  ;;  %v109_v30 = vadd.f32 %v108_v16, %v107_v10 }
  0x38   :  { %v81_v12 = vadd.f32 %v80_v4, %v1193_v60  ;;  %v87_v14 = vadd.f32 %v86_v5, %v1195_v61  ;;  %v93_v24 = vadd.f32 %v92_v6, %v1197_v62  ;;  %v99_v25 = vadd.f32 %v98_v7, %v1199_v63 }
  0x39   :  { %v112_v4 = vrot.slane %v111_v55, 2 }
  0x3a   :  { %v82_v56 = vrot.slane %v81_v12, 2  ;;  %v88_v57 = vrot.slane %v87_v14, 2  ;;  %v94_v2 = vrot.slane %v93_v24, 2  ;;  %v100_v3 = vrot.slane %v99_v25, 2  ;;  %726 = vmatpush1.bf16.xpose.msra.mxu0 %v939_v31  ;;  %766 = vmatpush1.bf16.xpose.msra.mxu1 %v941_v32 }
  0x3b   :  { %727 = vmatprep.subr.bf16.mxu0 %v932_v36  ;;  %v113_v11 = vadd.f32 %v112_v4, %v111_v55  ;;  %767 = vmatprep.subr.bf16.mxu1 %v934_v37 }
  0x3c   :  { %v83_v5 = vadd.f32 %v82_v56, %v81_v12  ;;  %v89_v6 = vadd.f32 %v88_v57, %v87_v14  ;;  %v95_v7 = vadd.f32 %v94_v2, %v93_v24  ;;  %v101_v50 = vadd.f32 %v100_v3, %v99_v25 }
  0x3d   :  { %v73_v14 = vadd.f32 %v72_v8, %v71_v54  ;;  %v79_v24 = vadd.f32 %v78_v9, %v77_v53  ;;  %v114_v17 = vrot.slane %v113_v11, 1  ;;  %v123_v3 = vmul.f32 0.125, %v109_v30 }
  0x3e   :  { %v84_v13 = vrot.slane %v83_v5, 1  ;;  %v90_v15 = vrot.slane %v89_v6, 1  ;;  %v96_v31 = vrot.slane %v95_v7, 1  ;;  %v102_v12 = vrot.slane %v101_v50, 1 }
  0x3f   :  { %v115_v56 = vadd.f32 %v114_v17, %v113_v11  ;;  %v117_v51 = vmul.f32 0.125, %v73_v14  ;;  %v118_v52 = vmul.f32 0.125, %v79_v24  ;;  %v1261_v18 = vsub.f32 %v1201_v0, %v123_v3 }
  0x40   :  { %v85_v32 = vadd.f32 %v84_v13, %v83_v5  ;;  %v91_v25 = vadd.f32 %v90_v15, %v89_v6  ;;  %v97_v29 = vadd.f32 %v96_v31, %v95_v7  ;;  %v103_v36 = vadd.f32 %v102_v12, %v101_v50 }
  0x41   :  { %v124_v4 = vmul.f32 0.125, %v115_v56  ;;  %v1234_v49 = vsub.f32 %v1189_v58, %v117_v51  ;;  %v1237_v53 = vsub.f32 %v1191_v59, %v118_v52  ;;  %v139_v59 = vmul.f32 %v1261_v18, %v1261_v18 }
  0x42   :  { %v119_v55 = vmul.f32 0.125, %v85_v32  ;;  %v120_v57 = vmul.f32 0.125, %v91_v25  ;;  %v121_v2 = vmul.f32 0.125, %v97_v29  ;;  %v122_v37 = vmul.f32 0.125, %v103_v36  ;;  %728 = vmatpush1.bf16.xpose.msra.mxu0 %v931_v38  ;;  %768 = vmatpush1.bf16.xpose.msra.mxu1 %v933_v39 }
  0x43   :  { %729 = vmatprep.subr.bf16.mxu0 %v924_v43  ;;  %v1264_v19 = vsub.f32 %v1203_v1, %v124_v4  ;;  %v133_v38 = vmul.f32 %v1234_v49, %v1234_v49  ;;  %769 = vmatprep.subr.bf16.mxu1 %v926_v44  ;;  %v134_v20 = vmul.f32 %v1237_v53, %v1237_v53  ;;  %v177_v8 = vrot.slane %v139_v59, 4 }
  0x44   :  { %v1243_v50 = vsub.f32 %v1193_v60, %v119_v55  ;;  %v1246_v54 = vsub.f32 %v1195_v61, %v120_v57  ;;  %v1249_v5 = vsub.f32 %v1197_v62, %v121_v2  ;;  %v1252_v6 = vsub.f32 %v1199_v63, %v122_v37 }
  0x45   :  { %v140_v44 = vmul.f32 %v1264_v19, %v1264_v19  ;;  %v141_v60 = vrot.slane %v133_v38, 4  ;;  %v147_v61 = vrot.slane %v134_v20, 4  ;;  %v178_v14 = vadd.f32 %v177_v8, %v139_v59 }
  0x46   :  { %v135_v21 = vmul.f32 %v1243_v50, %v1243_v50  ;;  %v136_v39 = vmul.f32 %v1246_v54, %v1246_v54  ;;  %v137_v43 = vmul.f32 %v1249_v5, %v1249_v5  ;;  %v138_v58 = vmul.f32 %v1252_v6, %v1252_v6 }
  0x47   :  { %v142_v1 = vadd.f32 %v141_v60, %v133_v38  ;;  %v183_v9 = vrot.slane %v140_v44, 4  ;;  %v148_v10 = vadd.f32 %v147_v61, %v134_v20  ;;  %v179_v30 = vrot.slane %v178_v14, 2 }
  0x48   :  { %v153_v62 = vrot.slane %v135_v21, 4  ;;  %v159_v63 = vrot.slane %v136_v39, 4  ;;  %v165_v0 = vrot.slane %v137_v43, 4  ;;  %v171_v7 = vrot.slane %v138_v58, 4 }
  0x49   :  { %v143_v31 = vrot.slane %v142_v1, 2  ;;  %v184_v24 = vadd.f32 %v183_v9, %v140_v44  ;;  %v149_v16 = vrot.slane %v148_v10, 2  ;;  %v180_v26 = vadd.f32 %v179_v30, %v178_v14 }
  0x4a   :  { %v154_v11 = vadd.f32 %v153_v62, %v135_v21  ;;  %v160_v13 = vadd.f32 %v159_v63, %v136_v39  ;;  %v166_v15 = vadd.f32 %v165_v0, %v137_v43  ;;  %v172_v12 = vadd.f32 %v171_v7, %v138_v58  ;;  %730 = vmatpush1.bf16.xpose.msra.mxu0 %v923_v45  ;;  %v330_v63 = vld [vmem:[#allocation7] sm:$0xff] }
  0x4b   :  { %770 = vmatpush1.bf16.xpose.msra.mxu1 %v925_v46  ;;  %731 = vmatprep.subr.bf16.mxu0 %v916_v48  ;;  %v144_v29 = vadd.f32 %v143_v31, %v142_v1  ;;  %v185_v56 = vrot.slane %v184_v24, 2  ;;  %v150_v23 = vadd.f32 %v149_v16, %v148_v10  ;;  %v181_v38 = vrot.slane %v180_v26, 1  ;;  %v331_v16 = vld [vmem:[#allocation7 + $0x8] sm:$0xff] }
  0x4c   :  { %v155_v17 = vrot.slane %v154_v11, 2  ;;  %v161_v32 = vrot.slane %v160_v13, 2  ;;  %v167_v25 = vrot.slane %v166_v15, 2  ;;  %v173_v36 = vrot.slane %v172_v12, 2  ;;  %771 = vmatprep.subr.bf16.mxu1 %v1356_v22 }
  0x4d   :  { %v145_v55 = vrot.slane %v144_v29, 1  ;;  %v186_v27 = vadd.f32 %v185_v56, %v184_v24  ;;  %v151_v46 = vrot.slane %v150_v23, 1  ;;  %v182_v44 = vadd.f32 %v181_v38, %v180_v26 }
  0x4e   :  { %v156_v45 = vadd.f32 %v155_v17, %v154_v11  ;;  %v162_v51 = vadd.f32 %v161_v32, %v160_v13  ;;  %v168_v52 = vadd.f32 %v167_v25, %v166_v15  ;;  %v174_v57 = vadd.f32 %v173_v36, %v172_v12  ;;  %v334_v11 = vld [vmem:[#allocation7 + $0x20] sm:$0xff]  ;;  %v335_v17 = vld [vmem:[#allocation7 + $0x28] sm:$0xff] }
  0x4f   :  { %v146_v3 = vadd.f32 %v145_v55, %v144_v29  ;;  %v187_v20 = vrot.slane %v186_v27, 1  ;;  %v152_v21 = vadd.f32 %v151_v46, %v150_v23  ;;  %v1357_v62 = vcombine.low %v1137_v28, %v1147_v33 }
  0x50   :  { %v157_v2 = vrot.slane %v156_v45, 1  ;;  %v163_v37 = vrot.slane %v162_v51, 1  ;;  %v169_v48 = vrot.slane %v168_v52, 1  ;;  %v175_v4 = vrot.slane %v174_v57, 1 }
  0x51   :  { %v188_v60 = vadd.f32 %v187_v20, %v186_v27  ;;  %v189_v61 = vmul.f32 0.125, %v146_v3  ;;  %v190_v0 = vmul.f32 0.125, %v152_v21  ;;  %v1358_v9 = vcombine.low %v1149_v34, %v1151_v35 }
  0x52   :  { %v158_v39 = vadd.f32 %v157_v2, %v156_v45  ;;  %v164_v43 = vadd.f32 %v163_v37, %v162_v51  ;;  %v170_v58 = vadd.f32 %v169_v48, %v168_v52  ;;  %v176_v59 = vadd.f32 %v175_v4, %v174_v57  ;;  %732 = vmatpush1.bf16.xpose.msra.mxu0 %v1357_v62 }
  0x53   :  { %772 = vmatpush1.bf16.xpose.msra.mxu1 %v1358_v9  ;;  %v1359_v10 = vcombine.high %v1161_v40, %v1163_v41  ;;  %v195_v15 = vmul.f32 0.125, %v182_v44  ;;  %v196_v31 = vmul.f32 0.125, %v188_v60  ;;  %v198_v12 = vadd.f32 1e-05, %v189_v61 }
  0x54   :  { %v191_v1 = vmul.f32 0.125, %v158_v39  ;;  %v192_v7 = vmul.f32 0.125, %v164_v43  ;;  %v193_v8 = vmul.f32 0.125, %v170_v58  ;;  %v194_v13 = vmul.f32 0.125, %v176_v59 }
  0x55   :  { %733 = vmatprep.subr.bf16.mxu0 %v1359_v10  ;;  %v1360_v28 = vcombine.high %v1165_v42, %v1175_v47  ;;  %v199_v33 = vadd.f32 1e-05, %v190_v0  ;;  %970 = vrsqrt.f32 %v198_v12  ;;  %v907_v35 = vcombine.low %v1161_v40, %v1163_v41  ;;  %v1313_v40 = vld [vmem:[#allocation7 + $0x1d0] sm:$0xff] }
  0x56   :  { %v200_v14 = vadd.f32 1e-05, %v191_v1  ;;  %v201_v24 = vadd.f32 1e-05, %v192_v7  ;;  %v202_v34 = vadd.f32 1e-05, %v193_v8  ;;  %v909_v25 = vcombine.low %v1165_v42, %v1175_v47 }
  0x57   :  { %773 = vmatprep.subr.bf16.mxu1 %v1360_v28  ;;  %v203_v32 = vadd.f32 1e-05, %v194_v13  ;;  %972 = vrsqrt.f32 %v199_v33  ;;  %v900_v29 = vcombine.high %v330_v63, %v334_v11  ;;  %v204_v36 = vadd.f32 1e-05, %v195_v15  ;;  %v1315_v41 = vld [vmem:[#allocation7 + $0x1f0] sm:$0xff]  ;;  %v1317_v42 = vld [vmem:[#allocation7 + $0x1d8] sm:$0xff] }
  0x58   :  { %974 = vrsqrt.f32 %v200_v14  ;;  %v902_v30 = vcombine.high %v331_v16, %v335_v17  ;;  %v205_v56 = vadd.f32 1e-05, %v196_v31  ;;  %v1077_v22 = vmov 1966171168   ;;  %v1319_v47 = vld [vmem:[#allocation7 + $0x1f8] sm:$0xff] }
  0x59   :  { %976 = vrsqrt.f32 %v201_v24  ;;  %v227_v23 = vunpack.c.l.s4 %v1077_v22  ;;  %v229_v45 = vlaneseq  ;;  %v899_v51 = vcombine.low %v330_v63, %v334_v11  ;;  %v197_v8 = vld [vmem:[#allocation5] sm:$0xff] }
  0x5a   :  { %978 = vrsqrt.f32 %v202_v34  ;;  %734 = vmatpush1.bf16.xpose.msra.mxu0 %v907_v35  ;;  %v901_v57 = vcombine.low %v331_v16, %v335_v17  ;;  %v960_v26 = vcombine.high %v1313_v40, %v1315_v41  ;;  %v962_v27 = vcombine.high %v1317_v42, %v1319_v47 }
  0x5b   :  { %980 = vrsqrt.f32 %v203_v32  ;;  %774 = vmatpush1.bf16.xpose.msra.mxu1 %v909_v25  ;;  %735 = vmatprep.subr.bf16.mxu0 %v900_v29  ;;  %v228_v52 = vunpack.c.0.s8 %v227_v23  ;;  %v230_v55 = vshrl.u32 %v229_v45, 7  ;;  %v959_v24 = vcombine.low %v1313_v40, %v1315_v41  ;;  %v380_v25 = vld [vmem:[#allocation7 + $0x190] sm:$0xff] }
  0x5c   :  { %982 = vrsqrt.f32 %v204_v36  ;;  %775 = vmatprep.subr.bf16.mxu1 %v902_v30  ;;  %v961_v16 = vcombine.low %v1317_v42, %v1319_v47  ;;  %v384_v41 = vld [vmem:[#allocation7 + $0x1b0] sm:$0xff]  ;;  %v385_v42 = vld [vmem:[#allocation7 + $0x1b8] sm:$0xff] }
  0x5d   :  { %984 = vrsqrt.f32 %v205_v56  ;;  %v231_v2 = vsub.s32 %v228_v52, %v230_v55  ;;  %v280_v9 = vsub.s32 1, %v230_v55  ;;  %v288_v11 = vsub.s32 3, %v230_v55 }
  0x5e   :  { %v276_v13 = vsub.s32 0, %v230_v55  ;;  %v284_v15 = vsub.s32 2, %v230_v55  ;;  %v296_v31 = vsub.s32 5, %v230_v55  ;;  %v304_v12 = vsub.s32 7, %v230_v55 }
  0x5f   :  { %v292_v28 = vsub.s32 4, %v230_v55  ;;  %v300_v33 = vsub.s32 6, %v230_v55 }
  0x62   :  { %v971_v46 = vpop.eup %970  ;;  %736 = vmatpush1.bf16.xpose.msra.mxu0 %v899_v51  ;;  %v381_v51 = vld [vmem:[#allocation7 + $0x198] sm:$0xff] }
  0x63   :  { %776 = vmatpush1.bf16.xpose.msra.mxu1 %v901_v57  ;;  %801 = vmatprep.subr.bf16.mxu0 %v960_v26 }
  0x64   :  { %v973_v37 = vpop.eup %972  ;;  %841 = vmatprep.subr.bf16.mxu1 %v962_v27 }
  0x65   :  { %v975_v48 = vpop.eup %974  ;;  %v222_v3 = vcombine.low %v971_v46, %v973_v37  ;;  %v954_v46 = vcombine.high %v381_v51, %v385_v42  ;;  %v951_v37 = vcombine.low %v380_v25, %v384_v41 }
  0x66   :  { %v977_v4 = vpop.eup %976 }
  0x67   :  { %v979_v38 = vpop.eup %978  ;;  %v223_v20 = vcombine.low %v975_v48, %v977_v4  ;;  %v232_v21 = vrot.slane %v222_v3, %v231_v2  ;;  %v953_v48 = vcombine.low %v381_v51, %v385_v42 }
  0x68   :  { %v981_v39 = vpop.eup %980 }
  0x69   :  { %v983_v43 = vpop.eup %982  ;;  %v224_v58 = vcombine.low %v979_v38, %v981_v39  ;;  %v239_v59 = vrot.slane %v223_v20, %v231_v2  ;;  %v364_v38 = vld [vmem:[#allocation7 + $0x110] sm:$0xff]  ;;  %v369_v39 = vld [vmem:[#allocation7 + $0x138] sm:$0xff] }
  0x6a   :  { %v985_v44 = vpop.eup %984  ;;  %v368_v20 = vld [vmem:[#allocation7 + $0x130] sm:$0xff] }
  0x6b   :  { %v225_v60 = vcombine.low %v983_v43, %v985_v44  ;;  %v246_v61 = vrot.slane %v224_v58, %v231_v2  ;;  %v254_v62 = vcombine.low %v232_v21, %v239_v59  ;;  %v365_v21 = vld [vmem:[#allocation7 + $0x118] sm:$0xff]  ;;  %v936_v59 = vcombine.high %v364_v38, %v368_v20 }
  0x6c   :  { %v938_v44 = vcombine.high %v365_v21, %v369_v39 }
  0x6d   :  { %v253_v63 = vrot.slane %v225_v60, %v231_v2  ;;  %v262_v1 = vrot.slane %v254_v62, %v231_v2  ;;  %v356_v60 = vld [vmem:[#allocation7 + $0xd0] sm:$0xff]  ;;  %v357_v62 = vld [vmem:[#allocation7 + $0xd8] sm:$0xff] }
  0x6f   :  { %v255_v0 = vcombine.low %v246_v61, %v253_v63  ;;  %v360_v61 = vld [vmem:[#allocation7 + $0xf0] sm:$0xff]  ;;  %v361_v63 = vld [vmem:[#allocation7 + $0xf8] sm:$0xff] }
  0x71   :  { %v269_v7 = vrot.slane %v255_v0, %v231_v2  ;;  %v935_v0 = vcombine.low %v364_v38, %v368_v20 }
  0x73   :  { %v270_v10 = vcombine.low %v262_v1, %v269_v7  ;;  %v937_v1 = vcombine.low %v365_v21, %v369_v39  ;;  %v928_v7 = vcombine.high %v356_v60, %v360_v61 }
  0x75   :  { %v272_v14 = vmul.f32 %v270_v10, %v197_v8  ;;  %v930_v8 = vcombine.high %v357_v62, %v361_v63  ;;  %v352_v10 = vld [vmem:[#allocation7 + $0xb0] sm:$0xff] }
  0x77   :  { %v281_v17 = vrot.slane %v272_v14, %v280_v9  ;;  %v289_v34 = vrot.slane %v272_v14, %v288_v11  ;;  %v277_v35 = vrot.slane %v272_v14, %v276_v13  ;;  %v285_v32 = vrot.slane %v272_v14, %v284_v15  ;;  %v348_v9 = vld [vmem:[#allocation7 + $0x90] sm:$0xff]  ;;  %v349_v11 = vld [vmem:[#allocation7 + $0x98] sm:$0xff] }
  0x78   :  { %v297_v29 = vrot.slane %v272_v14, %v296_v31  ;;  %v305_v36 = vrot.slane %v272_v14, %v304_v12  ;;  %v293_v30 = vrot.slane %v272_v14, %v292_v28  ;;  %v301_v56 = vrot.slane %v272_v14, %v300_v33  ;;  %v353_v13 = vld [vmem:[#allocation7 + $0xb8] sm:$0xff]  ;;  %v340_v33 = vld [vmem:[#allocation7 + $0x50] sm:$0xff] }
  0x79   :  { %v315_v22 = vmul.f32 %v281_v17, %v1237_v53  ;;  %v317_v23 = vmul.f32 %v289_v34, %v1246_v54  ;;  %v314_v45 = vmul.f32 %v277_v35, %v1234_v49  ;;  %v316_v40 = vmul.f32 %v285_v32, %v1243_v50  ;;  %v344_v14 = vld [vmem:[#allocation7 + $0x70] sm:$0xff] }
  0x7a   :  { %v319_v47 = vmul.f32 %v297_v29, %v1252_v6  ;;  %v321_v52 = vmul.f32 %v305_v36, %v1264_v19  ;;  %v1336_v55 = vmul.f32 %v293_v30, %v1249_v5  ;;  %v1339_v57 = vmul.f32 %v301_v56, %v1261_v18  ;;  %v372_v5 = vld [vmem:[#allocation7 + $0x150] sm:$0xff]  ;;  %v373_v18 = vld [vmem:[#allocation7 + $0x158] sm:$0xff] }
  0x7b   :  { %v323_v53 = vpack.c.bf16 %v315_v22, %v315_v22  ;;  %v325_v26 = vpack.c.bf16 %v317_v23, %v317_v23  ;;  %v322_v54 = vpack.c.bf16 %v314_v45, %v314_v45  ;;  %v324_v27 = vpack.c.bf16 %v316_v40, %v316_v40  ;;  %v376_v6 = vld [vmem:[#allocation7 + $0x170] sm:$0xff]  ;;  %v377_v19 = vld [vmem:[#allocation7 + $0x178] sm:$0xff] }
  0x7c   :  { %v952_v49 = vcombine.high %v380_v25, %v384_v41  ;;  %v327_v50 = vpack.c.bf16 %v319_v47, %v319_v47  ;;  %v329_v2 = vpack.c.bf16 %v321_v52, %v321_v52  ;;  %v944_v3 = vcombine.high %v372_v5, %v376_v6  ;;  %v332_v25 = vld [vmem:[#allocation7 + $0x10] sm:$0xff]  ;;  %v333_v36 = vld [vmem:[#allocation7 + $0x18] sm:$0xff] }
  0x7d   :  { %753 = vmatprep.mubr.bf16.mxu0 %v323_v53  ;;  %793 = vmatprep.mubr.bf16.mxu1 %v325_v26  ;;  %v946_v4 = vcombine.high %v373_v18, %v377_v19  ;;  %v943_v43 = vcombine.low %v372_v5, %v376_v6  ;;  %v945_v58 = vcombine.low %v373_v18, %v377_v19  ;;  %v336_v29 = vld [vmem:[#allocation7 + $0x30] sm:$0xff]  ;;  %v337_v30 = vld [vmem:[#allocation7 + $0x38] sm:$0xff] }
  0x7e   :  { %754 = vmatmul.mubr.bf16.vlgmr.msra.gmra.mxu0 %v322_v54  ;;  %794 = vmatmul.mubr.bf16.vlgmr.msra.gmra.mxu1 %v324_v27  ;;  %v927_v15 = vcombine.low %v356_v60, %v360_v61  ;;  %v929_v31 = vcombine.low %v357_v62, %v361_v63  ;;  %v920_v12 = vcombine.high %v348_v9, %v352_v10 }
  0x7f   :  { %802 = vmatpush1.bf16.xpose.msra.mxu0 %v959_v24  ;;  %842 = vmatpush1.bf16.xpose.msra.mxu1 %v961_v16  ;;  %v922_v28 = vcombine.high %v349_v11, %v353_v13  ;;  %v341_v24 = vld [vmem:[#allocation7 + $0x58] sm:$0xff]  ;;  %v919_v17 = vcombine.low %v348_v9, %v352_v10  ;;  %v921_v34 = vcombine.low %v349_v11, %v353_v13 }
  0x80   :  { %803 = vmatprep.subr.bf16.mxu0 %v952_v49  ;;  %843 = vmatprep.subr.bf16.mxu1 %v954_v46  ;;  %v345_v16 = vld [vmem:[#allocation7 + $0x78] sm:$0xff]  ;;  %v912_v35 = vcombine.high %v340_v33, %v344_v14  ;;  %v911_v56 = vcombine.low %v340_v33, %v344_v14  ;;  %v904_v23 = vcombine.high %v332_v25, %v336_v29 }
  0x81   :  { %833 = vmatprep.mubr.bf16.mxu0 %v327_v50  ;;  %873 = vmatprep.mubr.bf16.mxu1 %v329_v2  ;;  %v914_v32 = vcombine.high %v341_v24, %v345_v16  ;;  %v913_v22 = vcombine.low %v341_v24, %v345_v16  ;;  %v906_v45 = vcombine.high %v333_v36, %v337_v30  ;;  %v898_v50 = vld [vmem:[%s1353_s2] ss:$0 sm:$0xff] }
  0x82   :  { %v903_v40 = vcombine.low %v332_v25, %v336_v29  ;;  %v905_v41 = vcombine.low %v333_v36, %v337_v30  ;;  %v326_v51 = vpack.c.bf16 %v1336_v55, %v1336_v55  ;;  %v328_v42 = vpack.c.bf16 %v1339_v57, %v1339_v57 }
  0x87   :  { %804 = vmatpush1.bf16.xpose.msra.mxu0 %v951_v37  ;;  %844 = vmatpush1.bf16.xpose.msra.mxu1 %v953_v48 }
  0x88   :  { %805 = vmatprep.subr.bf16.mxu0 %v944_v3  ;;  %845 = vmatprep.subr.bf16.mxu1 %v946_v4 }
  0x8f   :  { %806 = vmatpush1.bf16.xpose.msra.mxu0 %v943_v43  ;;  %846 = vmatpush1.bf16.xpose.msra.mxu1 %v945_v58 }
  0x90   :  { %807 = vmatprep.subr.bf16.mxu0 %v936_v59  ;;  %847 = vmatprep.subr.bf16.mxu1 %v938_v44 }
  0x97   :  { %808 = vmatpush1.bf16.xpose.msra.mxu0 %v935_v0  ;;  %848 = vmatpush1.bf16.xpose.msra.mxu1 %v937_v1 }
  0x98   :  { %809 = vmatprep.subr.bf16.mxu0 %v928_v7  ;;  %849 = vmatprep.subr.bf16.mxu1 %v930_v8 }
  0x9f   :  { %810 = vmatpush1.bf16.xpose.msra.mxu0 %v927_v15  ;;  %850 = vmatpush1.bf16.xpose.msra.mxu1 %v929_v31 }
  0xa0   :  { %811 = vmatprep.subr.bf16.mxu0 %v920_v12  ;;  %851 = vmatprep.subr.bf16.mxu1 %v922_v28 }
  0xa7   :  { %812 = vmatpush1.bf16.xpose.msra.mxu0 %v919_v17  ;;  %852 = vmatpush1.bf16.xpose.msra.mxu1 %v921_v34 }
  0xa8   :  { %813 = vmatprep.subr.bf16.mxu0 %v912_v35  ;;  %853 = vmatprep.subr.bf16.mxu1 %v914_v32 }
  0xaf   :  { %814 = vmatpush1.bf16.xpose.msra.mxu0 %v911_v56  ;;  %854 = vmatpush1.bf16.xpose.msra.mxu1 %v913_v22 }
  0xb0   :  { %815 = vmatprep.subr.bf16.mxu0 %v904_v23  ;;  %855 = vmatprep.subr.bf16.mxu1 %v906_v45 }
  0xb7   :  { %816 = vmatpush1.bf16.xpose.msra.mxu0 %v903_v40  ;;  %856 = vmatpush1.bf16.xpose.msra.mxu1 %v905_v41 }
  0xbe   :  { %834 = vmatmul.mubr.bf16.vlgmr.msra.gmra.mxu0 %v326_v51  ;;  %874 = vmatmul.mubr.bf16.vlgmr.msra.gmra.mxu1 %v328_v42 }
 0x13e   :  { %v755_v47 = vpop.f32.mrf.mxu0  ;;  %v795_v52 = vpop.f32.mrf.mxu1 }
 0x13f   :  { %v756_v2 = vadd.f32 %v898_v50, %v755_v47 }
 0x140   :  { %v757_v53 = vpop.f32.mrf.mxu0  ;;  %v797_v26 = vpop.f32.mrf.mxu1 }
 0x141   :  { %v796_v5 = vadd.f32 %v795_v52, %v756_v2 }
 0x142   :  { %v758_v54 = vpop.f32.mrf.mxu0  ;;  %v798_v27 = vpop.f32.mrf.mxu1 }
 0x144   :  { %v759_v49 = vpop.f32.mrf.mxu0  ;;  %v799_v46 = vpop.f32.mrf.mxu1 }
 0x17e   :  { %v835_v55 = vpop.f32.mrf.mxu0  ;;  %v875_v6 = vpop.f32.mrf.mxu1 }
 0x17f   :  { %v836_v57 = vadd.f32 %v835_v55, %v796_v5 }
 0x180   :  { %v837_v18 = vpop.f32.mrf.mxu0  ;;  %v877_v19 = vpop.f32.mrf.mxu1 }
 0x181   :  { %v876_v37 = vadd.f32 %v875_v6, %v836_v57 }
 0x182   :  { %v838_v48 = vpop.f32.mrf.mxu0  ;;  %v878_v3 = vpop.f32.mrf.mxu1 }
 0x183   :  { %881 = vst [vmem:[#allocation8] sm:$0xff] %v876_v37 }
 0x184   :  { %v839_v4 = vpop.f32.mrf.mxu0  ;;  %v879_v38 = vpop.f32.mrf.mxu1 }
 0x185   :  { %1057 = shalt.err (!%p1054_p5)
}
 0x186   :  { %891 = dma.vmem_to_hbm [thread:$0]  %s889_s6, 128, %s1355_s4, [#allocation4]  }
 0x187   :  { %1070 = dma.done.wait [#allocation4], 128  }
 0x188   :  { %1071 = vsyncadd [#allocation4], 4294967168 }
 0x189   :  { %895 = vsyncpa [#allocation3], 1 }
 0x18a   :  { %896 = vsyncpa [#allocation6], 1 }
 0x18b   :  { %897 = vsyncpa [#allocation4], 1 }

</bundles_post_ra>
